<compile_context>
chip_gen: v7x
topology: tpu7x:2x2x1
jax: 0.10.0
libtpu: 0.0.40
codegen_flags: <defaults>
</compile_context>

<pallas_src>
from functools import partial

import jax
import jax.numpy as jnp
from jax.experimental import pallas as pl
from jax.experimental.pallas import tpu as pltpu
import numpy as np


# ----------------------------------------------------------------------------
# Host-side helpers (parameter / interpolation-matrix setup)
# ----------------------------------------------------------------------------
def bilinear_interp_matrix(n_in: int, n_out: int) -> np.ndarray:
    """(n_out, n_in) matrix M with y = M @ x equal to PyTorch
    nn.Upsample(mode='bilinear', align_corners=True) along one axis."""
    m = np.zeros((n_out, n_in), dtype=np.float32)
    if n_out == 1:
        m[0, 0] = 1.0
        return m
    scale = (n_in - 1) / (n_out - 1)
    for i in range(n_out):
        src = i * scale
        p0 = min(max(int(np.floor(src)), 0), n_in - 1)
        p1 = min(p0 + 1, n_in - 1)
        frac = src - p0
        m[i, p0] += 1.0 - frac
        m[i, p1] += frac
    return m


def padded_interp_matrix(n_in: int, n_target: int) -> np.ndarray:
    """Upsample-by-2 interpolation matrix with the F.pad zero padding
    (left = diff//2, right = diff - diff//2) folded in. Shape (n_target, n_in)."""
    n_up = 2 * n_in
    diff = n_target - n_up
    # TODO(synk): negative diff (F.pad cropping when x2 < 2*x1) is not handled.
    assert diff >= 0, "x2 spatial size must be >= upsampled x1 size"
    pad_lo = diff // 2
    m = np.zeros((n_target, n_in), dtype=np.float32)
    m[pad_lo:pad_lo + n_up, :] = bilinear_interp_matrix(n_in, n_up)
    return m


# ----------------------------------------------------------------------------
# Pallas kernel: one batch element per grid step, all-2-D lane-dense matmuls
# ----------------------------------------------------------------------------
def up_kernel(x1_ref, x2_ref, wkT_ref, w1_ref, w2_ref, b_ref, o_ref):
    x1 = x1_ref[0]          # (C1, HW1)   flattened low-res spatial
    x2 = x2_ref[0]          # (C2, HW2)   flattened high-res spatial
    wkT = wkT_ref[...]      # (HW1, HW2)  kron(Wh, Ww)^T : bilinear resize + pad
    w1 = w1_ref[...]        # (Cout, C1)  1x1-conv weights for the x1 branch
    w2 = w2_ref[...]        # (Cout, C2)  1x1-conv weights for the x2 branch
    b = b_ref[...]          # (Cout, 1)

    # 1x1 conv commuted in front of the upsample: channel-reduce at low res.
    y1 = jnp.dot(w1, x1, preferred_element_type=jnp.float32)         # (Cout, HW1)
    # Bilinear upsample + zero pad, single lane-dense matmul (K = HW1).
    up = jnp.dot(y1.astype(wkT.dtype), wkT,
                 preferred_element_type=jnp.float32)                 # (Cout, HW2)
    # x2 branch of the 1x1 conv.
    y2 = jnp.dot(w2, x2, preferred_element_type=jnp.float32)         # (Cout, HW2)

    o_ref[0] = (y2 + up + b).astype(o_ref.dtype)


@partial(jax.jit, static_argnames=("compute_dtype",))
def up_forward(x1, x2, conv_w, conv_b, compute_dtype=None):
    """x1: (B, C1, H1, W1); x2: (B, C2, H2, W2); conv_w: (Cout, C2+C1, 1, 1).

    compute_dtype: optional MXU-input dtype (e.g. jnp.bfloat16 on v6e/v7x);
    accumulation stays float32, output keeps the x2 dtype.
    """
    B, C1, H1, W1 = x1.shape
    _, C2, H2, W2 = x2.shape
    Cout = conv_w.shape[0]
    HW1, HW2 = H1 * W1, H2 * W2

    # Separable bilinear+pad matrices, fused into one flattened-spatial matrix
    # (baked as a compile-time constant by jit).
    # TODO(synk): for large spatial sizes switch to the separable Wh/Ww path
    # (the kron matrix grows as (H2*W2) x (H1*W1)) and tile H2 across the grid.
    wh = padded_interp_matrix(H1, H2)                  # (H2, H1)
    ww = padded_interp_matrix(W1, W2)                  # (W2, W1)
    wkT = jnp.asarray(np.kron(wh, ww).T)               # (HW1, HW2)

    w_flat = conv_w.reshape(Cout, C2 + C1)
    w2_part = w_flat[:, :C2]                           # x2 comes first in the cat
    w1_part = w_flat[:, C2:]
    b2 = conv_b.reshape(Cout, 1).astype(jnp.float32)

    x1f = x1.reshape(B, C1, HW1)
    x2f = x2.reshape(B, C2, HW2)
    out_dtype = x2.dtype

    if compute_dtype is not None:
        x1f = x1f.astype(compute_dtype)
        x2f = x2f.astype(compute_dtype)
        wkT = wkT.astype(compute_dtype)
        w1_part = w1_part.astype(compute_dtype)
        w2_part = w2_part.astype(compute_dtype)

    out = pl.pallas_call(
        up_kernel,
        out_shape=jax.ShapeDtypeStruct((B, Cout, HW2), out_dtype),
        grid=(B,),
        in_specs=[
            pl.BlockSpec((1, C1, HW1), lambda b: (b, 0, 0)),
            pl.BlockSpec((1, C2, HW2), lambda b: (b, 0, 0)),
            pl.BlockSpec((HW1, HW2), lambda b: (0, 0)),
            pl.BlockSpec((Cout, C1), lambda b: (0, 0)),
            pl.BlockSpec((Cout, C2), lambda b: (0, 0)),
            pl.BlockSpec((Cout, 1), lambda b: (0, 0)),
        ],
        out_specs=pl.BlockSpec((1, Cout, HW2), lambda b: (b, 0, 0)),
        compiler_params=pltpu.CompilerParams(
            dimension_semantics=("parallel",),
            vmem_limit_bytes=32 * 1024 * 1024),
    )(x1f, x2f, wkT, w1_part, w2_part, b2)

    return out.reshape(B, Cout, H2, W2)


# ----------------------------------------------------------------------------
# Pure-JAX reference (independent of the kron construction)
# ----------------------------------------------------------------------------
def up_reference(x1, x2, conv_w, conv_b):
    B, C1, H1, W1 = x1.shape
    _, C2, H2, W2 = x2.shape
    wh = jnp.asarray(padded_interp_matrix(H1, H2))
    ww = jnp.asarray(padded_interp_matrix(W1, W2))
    up = jnp.einsum('ip,bcpq,jq->bcij', wh, x1, ww)
    cat = jnp.concatenate([x2, up], axis=1)
    w_flat = conv_w.reshape(conv_w.shape[0], -1)
    return jnp.einsum('oc,bcij->boij', w_flat, cat) + conv_b.reshape(1, -1, 1, 1)


if __name__ == "__main__":
    # Shapes consistent with Up(in_channels=8, out_channels=4, bilinear=True):
    # x1: (B, 4, 8, 8) -> upsampled to 16x16; x2: (B, 4, 16, 16).
    B, C1, C2, Cout = 2, 4, 4, 4
    H1 = W1 = 8
    H2 = W2 = 16

    key = jax.random.PRNGKey(0)
    k1, k2, kw, kb = jax.random.split(key, 4)
    x1 = jax.random.normal(k1, (B, C1, H1, W1), dtype=jnp.float32)
    x2 = jax.random.normal(k2, (B, C2, H2, W2), dtype=jnp.float32)
    conv_w = jax.random.normal(kw, (Cout, C1 + C2, 1, 1), dtype=jnp.float32) * 0.1
    conv_b = jax.random.normal(kb, (Cout,), dtype=jnp.float32) * 0.1

    out = up_forward(x1, x2, conv_w, conv_b)
    out = jax.block_until_ready(out)

    ref = up_reference(x1, x2, conv_w, conv_b)
    assert out.shape == (B, Cout, H2, W2)
    np.testing.assert_allclose(np.asarray(out), np.asarray(ref),
                               rtol=1e-5, atol=1e-5)
    print("KERNEL_OK")
</pallas_src>

<mosaic_0001>
module attributes {stable_mosaic.version = 11 : i64} {
  func.func @up_kernel(%arg0: i32, %arg1: memref<1x4x64xf32, #tpu.memory_space<vmem>>, %arg2: memref<1x4x256xf32, #tpu.memory_space<vmem>>, %arg3: memref<64x256xf32, #tpu.memory_space<vmem>>, %arg4: memref<4x4xf32, #tpu.memory_space<vmem>>, %arg5: memref<4x4xf32, #tpu.memory_space<vmem>>, %arg6: memref<4x1xf32, #tpu.memory_space<vmem>>, %arg7: memref<1x4x256xf32, #tpu.memory_space<vmem>>) attributes {dimension_semantics = [#tpu.dimension_semantics<parallel>], iteration_bounds = array<i64: 2>, scalar_prefetch = 0 : i64, scratch_operands = 0 : i64, tpu.core_type = #tpu.core_type<tc>, window_params = [{transform_indices = @transform_0, window_bounds = array<i64: 1, 4, 64>}, {transform_indices = @transform_1, window_bounds = array<i64: 1, 4, 256>}, {pipeline_mode = #tpu.pipeline_mode<synchronous>, transform_indices = @transform_2, window_bounds = array<i64: 64, 256>}, {pipeline_mode = #tpu.pipeline_mode<synchronous>, transform_indices = @transform_3, window_bounds = array<i64: 4, 4>}, {pipeline_mode = #tpu.pipeline_mode<synchronous>, transform_indices = @transform_4, window_bounds = array<i64: 4, 4>}, {pipeline_mode = #tpu.pipeline_mode<synchronous>, transform_indices = @transform_5, window_bounds = array<i64: 4, 1>}, {transform_indices = @transform_6, window_bounds = array<i64: 1, 4, 256>}]} {
    %c0 = arith.constant 0 : index
    %c0_0 = arith.constant 0 : index
    %c0_1 = arith.constant 0 : index
    %0 = vector.load %arg1[%c0, %c0_0, %c0_1] : memref<1x4x64xf32, #tpu.memory_space<vmem>>, vector<1x4x64xf32>
    %1 = vector.shape_cast %0 : vector<1x4x64xf32> to vector<4x64xf32>
    %c0_2 = arith.constant 0 : index
    %c0_3 = arith.constant 0 : index
    %c0_4 = arith.constant 0 : index
    %2 = vector.load %arg2[%c0_2, %c0_3, %c0_4] : memref<1x4x256xf32, #tpu.memory_space<vmem>>, vector<1x4x256xf32>
    %3 = vector.shape_cast %2 : vector<1x4x256xf32> to vector<4x256xf32>
    %c0_5 = arith.constant 0 : index
    %c0_6 = arith.constant 0 : index
    %4 = vector.load %arg3[%c0_5, %c0_6] : memref<64x256xf32, #tpu.memory_space<vmem>>, vector<64x256xf32>
    %c0_7 = arith.constant 0 : index
    %c0_8 = arith.constant 0 : index
    %5 = vector.load %arg4[%c0_7, %c0_8] : memref<4x4xf32, #tpu.memory_space<vmem>>, vector<4x4xf32>
    %c0_9 = arith.constant 0 : index
    %c0_10 = arith.constant 0 : index
    %6 = vector.load %arg5[%c0_9, %c0_10] : memref<4x4xf32, #tpu.memory_space<vmem>>, vector<4x4xf32>
    %c0_11 = arith.constant 0 : index
    %c0_12 = arith.constant 0 : index
    %7 = vector.load %arg6[%c0_11, %c0_12] : memref<4x1xf32, #tpu.memory_space<vmem>>, vector<4x1xf32>
    %cst = arith.constant dense<0.000000e+00> : vector<4x64xf32>
    %8 = tpu.matmul %5, %1, %cst {dimension_numbers = #tpu.dot_dimension_numbers<[1], [0], [0], [1], [0, 0, 1, 1], [], []>} : vector<4x4xf32>, vector<4x64xf32>, vector<4x64xf32> -> vector<4x64xf32>
    %cst_13 = arith.constant dense<0.000000e+00> : vector<4x256xf32>
    %9 = tpu.matmul %8, %4, %cst_13 {dimension_numbers = #tpu.dot_dimension_numbers<[1], [0], [0], [1], [0, 0, 1, 1], [], []>} : vector<4x64xf32>, vector<64x256xf32>, vector<4x256xf32> -> vector<4x256xf32>
    %cst_14 = arith.constant dense<0.000000e+00> : vector<4x256xf32>
    %10 = tpu.matmul %6, %3, %cst_14 {dimension_numbers = #tpu.dot_dimension_numbers<[1], [0], [0], [1], [0, 0, 1, 1], [], []>} : vector<4x4xf32>, vector<4x256xf32>, vector<4x256xf32> -> vector<4x256xf32>
    %11 = arith.addf %10, %9 : vector<4x256xf32>
    %12 = vector.broadcast %7 : vector<4x1xf32> to vector<4x256xf32>
    %13 = arith.addf %11, %12 : vector<4x256xf32>
    %c0_15 = arith.constant 0 : index
    %c0_16 = arith.constant 0 : index
    %c0_17 = arith.constant 0 : index
    %14 = vector.load %arg7[%c0_15, %c0_16, %c0_17] : memref<1x4x256xf32, #tpu.memory_space<vmem>>, vector<1x4x256xf32>
    %15 = vector.shape_cast %14 : vector<1x4x256xf32> to vector<4x256xf32>
    %16 = vector.shape_cast %13 : vector<4x256xf32> to vector<1x4x256xf32>
    tpu.vector_store %arg7[%c0_15, %c0_16, %c0_17], %16 {strides = array<i32>} : memref<1x4x256xf32, #tpu.memory_space<vmem>>, vector<1x4x256xf32>,
    return
  }
  func.func @transform_0(%arg0: i32) -> (i32, i32, i32) {
    %c0_i32 = arith.constant 0 : i32
    %c0_i32_0 = arith.constant 0 : i32
    %c0_i32_1 = arith.constant 0 : i32
    return %arg0, %c0_i32, %c0_i32_0 : i32, i32, i32
  }
  func.func @transform_1(%arg0: i32) -> (i32, i32, i32) {
    %c0_i32 = arith.constant 0 : i32
    %c0_i32_0 = arith.constant 0 : i32
    %c0_i32_1 = arith.constant 0 : i32
    return %arg0, %c0_i32, %c0_i32_0 : i32, i32, i32
  }
  func.func @transform_2(%arg0: i32) -> (i32, i32) {
    %c0_i32 = arith.constant 0 : i32
    %c0_i32_0 = arith.constant 0 : i32
    %c0_i32_1 = arith.constant 0 : i32
    return %c0_i32, %c0_i32_0 : i32, i32
  }
  func.func @transform_3(%arg0: i32) -> (i32, i32) {
    %c0_i32 = arith.constant 0 : i32
    %c0_i32_0 = arith.constant 0 : i32
    %c0_i32_1 = arith.constant 0 : i32
    return %c0_i32, %c0_i32_0 : i32, i32
  }
  func.func @transform_4(%arg0: i32) -> (i32, i32) {
    %c0_i32 = arith.constant 0 : i32
    %c0_i32_0 = arith.constant 0 : i32
    %c0_i32_1 = arith.constant 0 : i32
    return %c0_i32, %c0_i32_0 : i32, i32
  }
  func.func @transform_5(%arg0: i32) -> (i32, i32) {
    %c0_i32 = arith.constant 0 : i32
    %c0_i32_0 = arith.constant 0 : i32
    %c0_i32_1 = arith.constant 0 : i32
    return %c0_i32, %c0_i32_0 : i32, i32
  }
  func.func @transform_6(%arg0: i32) -> (i32, i32, i32) {
    %c0_i32 = arith.constant 0 : i32
    %c0_i32_0 = arith.constant 0 : i32
    %c0_i32_1 = arith.constant 0 : i32
    return %arg0, %c0_i32, %c0_i32_0 : i32, i32, i32
  }
}

</mosaic_0001>

<bundles_post_ra>
// kernel: up_forward.1
= control target key start
LH: loop header
LB: loop body
LE: loop exit
PB: predicated region body
PF: predicated region fallthrough
CT: control target
= control target key end

     0   :  { %s706_s21 = smov 0   ;;  %s796_s0 = inlined_call_operand.vmem [shape: f32[2,4,64], index: 0, kind: input, shape index: {}]   ;;  %s797_s1 = inlined_call_operand.vmem [shape: f32[2,4,256], index: 1, kind: input, shape index: {}]   ;;  %s798_s2 = inlined_call_operand.vmem [shape: f32[64,256], index: 2, kind: input, shape index: {}]   ;;  %s799_s3 = inlined_call_operand.vmem [shape: f32[4,4], index: 3, kind: input, shape index: {}]   ;;  %s800_s4 = inlined_call_operand.vmem [shape: f32[4,4], index: 4, kind: input, shape index: {}]   ;;  %s801_s5 = inlined_call_operand.vmem [shape: f32[4,1], index: 5, kind: input, shape index: {}]   ;;  %s802_s6 = inlined_call_operand.vmem [shape: f32[2,4,256], index: 6, kind: output, shape index: {}]  }
   0x1 LB: > { %s602_s22 = sadd.s32 4294967295, %s666_s21   ;;  %p606_p0 = scmp.ge.s32.totalorder %s666_s21, 1  ;;  %s666_s21 = sphi %s706_s21, %s16_s21  }
   0x2   : > { %p221_p1 = scmp.lt.s32.totalorder %s666_s21, 3 }
   0x4   : > { %p222_p2 = pnand %p606_p0, %p221_p1 }
   0x5   : > { %p255_p3 = scmp.lt.s32.totalorder (!%p222_p2), %s602_s22, 1  ;;  %v668_v0 = vmov (!%p222_p2), 0.0   ;;  %vm669_vm0 = vmmov (!%p222_p2), 0   ;;  %v272_v1 = vld [vmem:[%s798_s2 + $0x8] sm:$0xff] (!%p222_p2)  ;;  %v274_v2 = vld [vmem:[%s798_s2 + $0x18] sm:$0xff] (!%p222_p2)  ;;  %v271_v3 = vld [vmem:[%s798_s2] sm:$0xff] (!%p222_p2) }
   0x6   : > { %225 = sbr.rel (%p222_p2) target bundleno = 450 (0x1c2), region = 44  ;;  %624 = vmatprep.subr.mxu0 (!%p222_p2), %v668_v0  ;;  %626 = vmatprep.mubr.msk.f32.mxu0 (!%p222_p2), %vm669_vm0, %v668_v0  ;;  %v629_v4 = vpack.c.bf16 (!%p222_p2), %v274_v2, %v272_v1  ;;  %v273_v5 = vld [vmem:[%s798_s2 + $0x10] sm:$0xff] (!%p222_p2)  ;;  %v276_v6 = vld [vmem:[%s798_s2 + $0x28] sm:$0xff] (!%p222_p2)  ;;  %v278_v7 = vld [vmem:[%s798_s2 + $0x38] sm:$0xff] (!%p222_p2)  ;;  %vm294_vm1 = vcmask (!%p222_p2), 1043456   ;;  %vm290_vm2 = vcmask (!%p222_p2), 31744  }
   0x7   : > { %436 = vmatprep.mubr.f32.mxu1 (!%p222_p2), %v668_v0  ;;  %v631_v8 = vpack.c.bf16 (!%p222_p2), %v273_v5, %v271_v3  ;;  %v633_v9 = vpack.c.bf16 (!%p222_p2), %v278_v7, %v276_v6  ;;  %v275_v10 = vld [vmem:[%s798_s2 + $0x20] sm:$0xff] (!%p222_p2)  ;;  %v277_v11 = vld [vmem:[%s798_s2 + $0x30] sm:$0xff] (!%p222_p2)  ;;  %v280_v12 = vld [vmem:[%s798_s2 + $0x48] sm:$0xff] (!%p222_p2)  ;;  %v670_v31 = vmov (!%p222_p2), 0   ;;  %vm368_vm3 = vcmask (!%p222_p2), 523264  }
   0x8   : > { %630 = vmatprep.subr.bf16.mxu1 (!%p222_p2), %v629_v4  ;;  %v282_v13 = vld [vmem:[%s798_s2 + $0x58] sm:$0xff] (!%p222_p2)  ;;  %v287_v14 = vld [vmem:[%s799_s3] sm:$0xf] (!%p222_p2)  ;;  %v635_v15 = vpack.c.bf16 (!%p222_p2), %v277_v11, %v275_v10  ;;  %v281_v20 = vld [vmem:[%s798_s2 + $0x50] sm:$0xff] (!%p222_p2)  ;;  %658 = vset.pattern.permute.xlu0 (!%p222_p2), %v670_v31 }
   0x9   : > { %632 = vmatpush1.bf16.msra.mxu1 (!%p222_p2), %v631_v8  ;;  %v279_v16 = vld [vmem:[%s798_s2 + $0x40] sm:$0xff] (!%p222_p2)  ;;  %v637_v19 = vpack.c.bf16 (!%p222_p2), %v282_v13, %v280_v12  ;;  %v284_v22 = vld [vmem:[%s798_s2 + $0x68] sm:$0xff] (!%p222_p2)  ;;  %v286_v23 = vld [vmem:[%s798_s2 + $0x78] sm:$0xff] (!%p222_p2) }
   0xa   : > { %634 = vmatprep.subr.bf16.mxu1 (!%p222_p2), %v633_v9  ;;  %v639_v24 = vpack.c.bf16 (!%p222_p2), %v281_v20, %v279_v16  ;;  %v641_v25 = vpack.c.bf16 (!%p222_p2), %v286_v23, %v284_v22  ;;  %v283_v26 = vld [vmem:[%s798_s2 + $0x60] sm:$0xff] (!%p222_p2)  ;;  %v285_v27 = vld [vmem:[%s798_s2 + $0x70] sm:$0xff] (!%p222_p2) }
   0xb   : > { %v643_v28 = vpack.c.bf16 (!%p222_p2), %v285_v27, %v283_v26  ;;  %v288_v29 = vld [vmem:[%s800_s4] sm:$0xf] (!%p222_p2) }
   0xc   : > { %v289_v30 = vld [vmem:[%s801_s5] sm:$0xf] (!%p222_p2) }
   0xd   : > { %s804_s22 = smov (!%p255_p3, %s602_s22), 1  ;;  %636 = vmatpush1.bf16.msra.mxu1 %v635_v15  ;;  %525 = vperm.xlu0 %658, %v289_v30  }
   0xe   : > { %s607_s17 = sshll.u32 %s804_s22, 2  ;;  %s620_s18 = sshll.u32 %s804_s22, 3  ;;  %638 = vmatprep.subr.bf16.mxu1 %v637_v19 }
   0xf   : > { %s258_s25 = scalar_lea.vmem %s796_s0, %s607_s17  ;;  %s263_s28 = scalar_lea.vmem %s797_s1, %s620_s18 }
  0x10   : > { %v269_v17 = vld [vmem:[%s258_s25] sm:$0xf] }
  0x11   : > { %v270_v18 = vld [vmem:[%s263_s28] sm:$0xff]  ;;  %625 = vmatpush3.msk.msra.mxu0 %vm294_vm1, %v269_v17  ;;  %640 = vmatpush1.bf16.msra.mxu1 %v639_v24  ;;  %s268_s28 = scalar_lea.vmem %s802_s6, %s620_s18 }
  0x12   : > { %v444_v21 = vcombine.high %v270_v18, %v270_v18  ;;  %627 = vmatmul.mubr.msk.f32.vlgmr.msra.gmra.mrb[0].mxu0 %vm290_vm2, %v287_v14  ;;  %642 = vmatprep.subr.bf16.mxu1 %v641_v25 }
  0x13   : > { %516 = vmatprep.mubr.f32.mxu0 %v668_v0 }
  0x14   : > { %615 = vmatprep.subr.msk.mxu0 %vm294_vm1, %v444_v21 }
  0x15   : > { %616 = vmatpush1.msk.msra.mxu0 %vm294_vm1, %v270_v18  ;;  %644 = vmatpush1.bf16.msra.mxu1 %v643_v28 }
  0x16   : > { %617 = vmatmul.mubr.msk.f32.vlgmr.msra.gmra.mrb[2].mxu0 %vm290_vm2, %v288_v29 }
  0x8c   : > { %v526_v37 = vpop.permute.xlu0 %525 }
  0xe5   : > { %v364_v32 = vpop.f32.mrb[0].mxu0 }
  0xe6   : > { %v628_v33 = vpop.f32.mrb[1].mxu0  ;;  %614 = vmatmul.mubr.msk.f32.vlgmr.msra.gmra.mrb[0].mxu1 %vm368_vm3, %v364_v32 }
  0xe9   : > { %v518_v34 = vpop.f32.mrb[2].mxu0 }
  0xea   : > { %v520_v35 = vpop.f32.mrb[3].mxu0 }
 0x1b9   : > { %v438_v36 = vpop.f32.mrb[0].mxu1 }
 0x1ba   : > { %v519_v38 = vadd.f32 %v518_v34, %v438_v36  ;;  %v440_v39 = vpop.f32.mrb[1].mxu1 }
 0x1bb   : > { %v521_v40 = vadd.f32 %v520_v35, %v440_v39 }
 0x1bc   : > { %v528_v41 = vadd.f32 %v526_v37, %v519_v38 }
 0x1bd   : > { %v529_v42 = vadd.f32 %v526_v37, %v521_v40 }
 0x1bf   : > { %v532_v43 = vcombine.low %v528_v41, %v529_v42 }
 0x1c1   : > { %534 = vst [vmem:[%s268_s28] sm:$0xff] %v532_v43 }
 0x1c2 PF: > { %s16_s21 = sadd.s32 1, %s666_s21  }
 0x1c3   : > { %p13_p4 = scmp.ge.s32.totalorder %s16_s21, 4  }
 0x1c5   :  { %15 = sbr.rel (!%p13_p4) target bundleno = 1 (0x1), region = 77 }

</bundles_post_ra>
